<compile_context>
chip_gen: v6e
topology: v6e:2x2x1
jax: 0.10.0
libtpu: 0.0.40
codegen_flags: <defaults>
</compile_context>

<pallas_src>
import functools

import jax
import jax.numpy as jnp
from jax.experimental import pallas as pl
from jax.experimental.pallas import tpu as pltpu

_LANE = 128
_SUBLANE = 8
# ~2 MiB blocks hit the measured ~85% HBM-roofline operating point for mem-bound
# tiled kernels while staying far under VMEM on all of v5e/v6e/v7x.
_TARGET_BLOCK_BYTES = 2 * 1024 * 1024
# Largest single fused block we allow before falling back to the split-HW path.
_MAX_FUSED_BLOCK_BYTES = 8 * 1024 * 1024
# Explicit scoped-VMEM limit: above the 16/32 MiB defaults, safely below v7x's
# 64 MiB physical VMEM (and v5e/v6e's 128 MiB).
_VMEM_LIMIT_BYTES = 48 * 1024 * 1024


# ----------------------------- Pallas kernels -------------------------------------


def _adain_fused_kernel(x_ref, wb_ref, o_ref, *, eps, hw):
    """Single pass: per-row sum & sum-of-squares over the full H*W row, then affine."""
    x = x_ref[...].astype(jnp.float32)                        # (TR, HW)
    inv_hw = 1.0 / hw
    mean = jnp.sum(x, axis=1, keepdims=True) * inv_hw         # (TR, 1)
    ex2 = jnp.sum(x * x, axis=1, keepdims=True) * inv_hw
    var = jnp.maximum(ex2 - mean * mean, 0.0)                 # biased var; clamp cancellation
    inv = jax.lax.rsqrt(var + eps)                            # EUP slot (cheap)
    w = wb_ref[:, 0:1].astype(jnp.float32)
    b = wb_ref[:, 1:2].astype(jnp.float32)
    scale = inv * w
    shift = b - mean * scale
    o_ref[...] = (x * scale + shift).astype(o_ref.dtype)


def _adain_stats_kernel(x_ref, sums_ref):
    """Accumulate per-row [sum, sum_sq] across the HW grid axis (output accumulator)."""
    @pl.when(pl.program_id(1) == 0)
    def _():
        sums_ref[...] = jnp.zeros_like(sums_ref)

    x = x_ref[...].astype(jnp.float32)                        # (TR, THW)
    sums_ref[:, 0:1] += jnp.sum(x, axis=1, keepdims=True)
    sums_ref[:, 1:2] += jnp.sum(x * x, axis=1, keepdims=True)


def _adain_apply_kernel(x_ref, wb_ref, sums_ref, o_ref, *, eps, hw):
    """Normalize one (row_tile, hw_tile) block using precomputed per-row sums."""
    x = x_ref[...].astype(jnp.float32)
    inv_hw = 1.0 / hw
    mean = sums_ref[:, 0:1] * inv_hw
    var = jnp.maximum(sums_ref[:, 1:2] * inv_hw - mean * mean, 0.0)
    inv = jax.lax.rsqrt(var + eps)
    w = wb_ref[:, 0:1].astype(jnp.float32)
    b = wb_ref[:, 1:2].astype(jnp.float32)
    scale = inv * w
    shift = b - mean * scale
    o_ref[...] = (x * scale + shift).astype(o_ref.dtype)


# ------------------------------ tiling heuristics ----------------------------------


def _pick_row_tile(bc, hw, itemsize, target_block_bytes):
    """Rows per block: ~target_block_bytes per x block, multiple of 8, >=2 grid steps."""
    row_bytes = max(1, hw * itemsize)
    rt = max(_SUBLANE, (target_block_bytes // row_bytes) // _SUBLANE * _SUBLANE)
    rt = min(rt, pl.cdiv(bc, _SUBLANE) * _SUBLANE)
    # v7x has 2 TensorCores sharing the "parallel" grid axis: prefer >= 2 grid steps
    # whenever there is enough work (no-op on v5e/v6e).
    if bc > _SUBLANE:
        while rt > _SUBLANE and pl.cdiv(bc, rt) < 2:
            rt -= _SUBLANE
    return rt


def _pick_hw_tile(hw_pad, row_tile, itemsize, target_block_bytes):
    """Largest 128-multiple dividing hw_pad that keeps (row_tile, hw_tile) in budget."""
    max_elems = max(_LANE, (target_block_bytes // (row_tile * itemsize)) // _LANE * _LANE)
    t = min(hw_pad, max_elems)
    t = (t // _LANE) * _LANE
    while t > _LANE and hw_pad % t != 0:
        t -= _LANE
    return max(t, _LANE)


# --------------------------------- wrappers ----------------------------------------


def adaptive_instance_norm_2d(x, weight, bias, *, eps=1e-5,
                              target_block_bytes=_TARGET_BLOCK_BYTES,
                              max_fused_block_bytes=_MAX_FUSED_BLOCK_BYTES):
    """x: (B, C, H, W); weight, bias: (B*C,). Returns (B, C, H, W)."""
    B, C, H, W = x.shape
    BC, HW = B * C, H * W
    assert weight.shape == (BC,) and bias.shape == (BC,)

    itemsize = jnp.dtype(x.dtype).itemsize
    x2d = x.reshape(BC, HW)
    # Pack weight/bias into one (BC, 2) slab -> one small DMA per row tile, not two.
    wb2d = jnp.stack([weight, bias], axis=1).astype(jnp.float32)

    compiler_params_1d = pltpu.CompilerParams(
        dimension_semantics=("parallel",),
        vmem_limit_bytes=_VMEM_LIMIT_BYTES,
    )

    row_bytes = HW * itemsize
    rt = _pick_row_tile(BC, HW, itemsize, target_block_bytes)

    if rt * row_bytes <= max_fused_block_bytes:
        # ----------------------- fused single-pass path -----------------------------
        n_rows = pl.cdiv(BC, rt)
        bc_pad = n_rows * rt
        if bc_pad != BC:
            # Zero padding rows: var=0 -> rsqrt(eps) finite; rows are sliced off below.
            x2d_p = jnp.pad(x2d, ((0, bc_pad - BC), (0, 0)))
            wb_p = jnp.pad(wb2d, ((0, bc_pad - BC), (0, 0)))
        else:
            x2d_p, wb_p = x2d, wb2d

        out2d = pl.pallas_call(
            functools.partial(_adain_fused_kernel, eps=eps, hw=float(HW)),
            out_shape=jax.ShapeDtypeStruct((bc_pad, HW), x.dtype),
            grid_spec=pltpu.PrefetchScalarGridSpec(
                num_scalar_prefetch=0,
                grid=(n_rows,),
                in_specs=[
                    pl.BlockSpec((rt, HW), lambda i: (i, 0)),
                    pl.BlockSpec((rt, 2), lambda i: (i, 0)),
                ],
                out_specs=pl.BlockSpec((rt, HW), lambda i: (i, 0)),
            ),
            compiler_params=compiler_params_1d,
        )(x2d_p, wb_p)
        return out2d[:BC].reshape(B, C, H, W)

    # --------------------- split-HW fallback (very large images) -------------------
    rt = _SUBLANE
    n_rows = pl.cdiv(BC, rt)
    bc_pad = n_rows * rt
    hw_pad = pl.cdiv(HW, _LANE) * _LANE
    hw_tile = _pick_hw_tile(hw_pad, rt, itemsize, target_block_bytes)
    n_hw = hw_pad // hw_tile

    pad_r, pad_c = bc_pad - BC, hw_pad - HW
    # Zero padding along HW contributes 0 to sum / sum_sq; we divide by the true HW.
    x2d_p = jnp.pad(x2d, ((0, pad_r), (0, pad_c))) if (pad_r or pad_c) else x2d
    wb_p = jnp.pad(wb2d, ((0, pad_r), (0, 0))) if pad_r else wb2d

    sums = pl.pallas_call(
        _adain_stats_kernel,
        out_shape=jax.ShapeDtypeStruct((bc_pad, 2), jnp.float32),
        grid_spec=pltpu.PrefetchScalarGridSpec(
            num_scalar_prefetch=0,
            grid=(n_rows, n_hw),
            in_specs=[pl.BlockSpec((rt, hw_tile), lambda i, j: (i, j))],
            out_specs=pl.BlockSpec((rt, 2), lambda i, j: (i, 0)),
        ),
        compiler_params=pltpu.CompilerParams(
            dimension_semantics=("parallel", "arbitrary"),
            vmem_limit_bytes=_VMEM_LIMIT_BYTES,
        ),
    )(x2d_p)

    out2d = pl.pallas_call(
        functools.partial(_adain_apply_kernel, eps=eps, hw=float(HW)),
        out_shape=jax.ShapeDtypeStruct((bc_pad, hw_pad), x.dtype),
        grid_spec=pltpu.PrefetchScalarGridSpec(
            num_scalar_prefetch=0,
            grid=(n_rows, n_hw),
            in_specs=[
                pl.BlockSpec((rt, hw_tile), lambda i, j: (i, j)),
                pl.BlockSpec((rt, 2), lambda i, j: (i, 0)),
                pl.BlockSpec((rt, 2), lambda i, j: (i, 0)),
            ],
            out_specs=pl.BlockSpec((rt, hw_tile), lambda i, j: (i, j)),
        ),
        compiler_params=pltpu.CompilerParams(
            dimension_semantics=("parallel", "parallel"),
            vmem_limit_bytes=_VMEM_LIMIT_BYTES,
        ),
    )(x2d_p, wb_p, sums)

    return out2d[:BC, :HW].reshape(B, C, H, W)


def conv2d_block_forward(x, conv_w, conv_b, adain_weight, adain_bias, *,
                         stride=1, padding=1, upsample=False, activation=None,
                         eps=1e-5, _norm_fn=None):
    """Conv2dBlock forward with norm='AdaIn'; the AdaIN norm is the Pallas kernel."""
    norm_fn = _norm_fn or adaptive_instance_norm_2d
    if upsample:  # nn.Upsample(scale_factor=2, mode='nearest')
        x = jnp.repeat(jnp.repeat(x, 2, axis=2), 2, axis=3)
    y = jax.lax.conv_general_dilated(
        x, conv_w, window_strides=(stride, stride),
        padding=[(padding, padding), (padding, padding)],
        dimension_numbers=("NCHW", "OIHW", "NCHW"))
    if conv_b is not None:
        y = y + conv_b[None, :, None, None]
    y = norm_fn(y, adain_weight, adain_bias, eps=eps)
    if activation == "ReLU":
        y = jnp.maximum(y, 0.0)
    elif activation == "LeakyReLU":
        y = jnp.where(y >= 0, y, 0.2 * y)
    elif activation == "Tanh":
        y = jnp.tanh(y)
    return y


# -------------------------------- references ---------------------------------------


def _adain_reference(x, weight, bias, eps=1e-5):
    B, C, H, W = x.shape
    xr = x.reshape(B * C, H * W).astype(jnp.float32)
    mean = xr.mean(axis=1, keepdims=True)
    var = ((xr - mean) ** 2).mean(axis=1, keepdims=True)
    out = (xr - mean) / jnp.sqrt(var + eps)
    out = out * weight[:, None] + bias[:, None]
    return out.reshape(B, C, H, W).astype(x.dtype)


# ----------------------------------- main -------------------------------------------


if __name__ == "__main__":
    eps = 1e-5
    key = jax.random.PRNGKey(0)
    k = jax.random.split(key, 6)

    # 1) AdaIN Pallas kernel, fused single-pass path.
    B, C, H, W = 2, 4, 16, 16
    x = jax.random.normal(k[0], (B, C, H, W), dtype=jnp.float32)
    weight = jax.random.normal(k[1], (B * C,), dtype=jnp.float32)
    bias = jax.random.normal(k[2], (B * C,), dtype=jnp.float32)

    out = jax.block_until_ready(adaptive_instance_norm_2d(x, weight, bias, eps=eps))
    ref = _adain_reference(x, weight, bias, eps=eps)
    assert out.shape == (B, C, H, W)
    assert jnp.allclose(out, ref, atol=1e-4, rtol=1e-4), "fused AdaIN mismatch"

    # 2) AdaIN split-HW fallback path (forced with a tiny block budget).
    out_split = jax.block_until_ready(
        adaptive_instance_norm_2d(x, weight, bias, eps=eps,
                                  target_block_bytes=4096,
                                  max_fused_block_bytes=4096))
    assert jnp.allclose(out_split, ref, atol=1e-4, rtol=1e-4), "split AdaIN mismatch"

    # 3) Full Conv2dBlock(norm='AdaIn', activation='ReLU') forward.
    Cin, Cout, ksz = 3, 4, 3
    xb = jax.random.normal(k[3], (B, Cin, H, W), dtype=jnp.float32)
    conv_w = 0.1 * jax.random.normal(k[4], (Cout, Cin, ksz, ksz), dtype=jnp.float32)
    conv_b = 0.1 * jax.random.normal(k[5], (Cout,), dtype=jnp.float32)
    a_w = 1.0 + 0.1 * jax.random.normal(k[1], (B * Cout,), dtype=jnp.float32)
    a_b = 0.1 * jax.random.normal(k[2], (B * Cout,), dtype=jnp.float32)

    y = jax.block_until_ready(
        conv2d_block_forward(xb, conv_w, conv_b, a_w, a_b,
                             stride=1, padding=1, activation="ReLU", eps=eps))
    y_ref = conv2d_block_forward(xb, conv_w, conv_b, a_w, a_b,
                                 stride=1, padding=1, activation="ReLU", eps=eps,
                                 _norm_fn=_adain_reference)
    assert y.shape == (B, Cout, H, W)
    assert jnp.allclose(y, y_ref, atol=1e-4, rtol=1e-4), "Conv2dBlock mismatch"

    print("KERNEL_OK")
</pallas_src>

<mosaic_0001>
module attributes {stable_mosaic.version = 11 : i64} {
  func.func @_adain_fused_kernel(%arg0: i32, %arg1: memref<8x256xf32, #tpu.memory_space<vmem>>, %arg2: memref<8x2xf32, #tpu.memory_space<vmem>>, %arg3: memref<8x256xf32, #tpu.memory_space<vmem>>) attributes {dimension_semantics = [#tpu.dimension_semantics<parallel>], iteration_bounds = array<i64: 1>, scalar_prefetch = 0 : i64, scratch_operands = 0 : i64, tpu.core_type = #tpu.core_type<tc>, window_params = [{transform_indices = @transform_0, window_bounds = array<i64: 8, 256>}, {transform_indices = @transform_1, window_bounds = array<i64: 8, 2>}, {transform_indices = @transform_2, window_bounds = array<i64: 8, 256>}]} {
    %c0 = arith.constant 0 : index
    %c0_0 = arith.constant 0 : index
    %0 = vector.load %arg1[%c0, %c0_0] : memref<8x256xf32, #tpu.memory_space<vmem>>, vector<8x256xf32>
    %cst = arith.constant dense<0.000000e+00> : vector<8xf32>
    %1 = vector.multi_reduction <add>, %0, %cst [1] : vector<8x256xf32> to vector<8xf32>
    %2 = vector.shape_cast %1 : vector<8xf32> to vector<8x1xf32>
    %cst_1 = arith.constant 3.906250e-03 : f32
    %3 = vector.broadcast %cst_1 : f32 to vector<8x1xf32>
    %4 = arith.mulf %2, %3 : vector<8x1xf32>
    %5 = arith.mulf %0, %0 : vector<8x256xf32>
    %cst_2 = arith.constant dense<0.000000e+00> : vector<8xf32>
    %6 = vector.multi_reduction <add>, %5, %cst_2 [1] : vector<8x256xf32> to vector<8xf32>
    %7 = vector.shape_cast %6 : vector<8xf32> to vector<8x1xf32>
    %cst_3 = arith.constant 3.906250e-03 : f32
    %8 = vector.broadcast %cst_3 : f32 to vector<8x1xf32>
    %9 = arith.mulf %7, %8 : vector<8x1xf32>
    %10 = arith.mulf %4, %4 : vector<8x1xf32>
    %11 = arith.subf %9, %10 : vector<8x1xf32>
    %cst_4 = arith.constant 0.000000e+00 : f32
    %12 = vector.broadcast %cst_4 : f32 to vector<8x1xf32>
    %13 = arith.maximumf %11, %12 : vector<8x1xf32>
    %cst_5 = arith.constant 9.99999974E-6 : f32
    %14 = vector.broadcast %cst_5 : f32 to vector<8x1xf32>
    %15 = arith.addf %13, %14 : vector<8x1xf32>
    %16 = math.rsqrt %15 : vector<8x1xf32>
    %c0_6 = arith.constant 0 : index
    %c0_7 = arith.constant 0 : index
    %17 = vector.load %arg2[%c0_6, %c0_7] : memref<8x2xf32, #tpu.memory_space<vmem>>, vector<8x1xf32>
    %c0_8 = arith.constant 0 : index
    %c1 = arith.constant 1 : index
    %18 = vector.load %arg2[%c0_8, %c1] : memref<8x2xf32, #tpu.memory_space<vmem>>, vector<8x1xf32>
    %19 = arith.mulf %16, %17 : vector<8x1xf32>
    %20 = arith.mulf %4, %19 : vector<8x1xf32>
    %21 = arith.subf %18, %20 : vector<8x1xf32>
    %22 = vector.broadcast %19 : vector<8x1xf32> to vector<8x256xf32>
    %23 = arith.mulf %0, %22 : vector<8x256xf32>
    %24 = vector.broadcast %21 : vector<8x1xf32> to vector<8x256xf32>
    %25 = arith.addf %23, %24 : vector<8x256xf32>
    %c0_9 = arith.constant 0 : index
    %c0_10 = arith.constant 0 : index
    %26 = vector.load %arg3[%c0_9, %c0_10] : memref<8x256xf32, #tpu.memory_space<vmem>>, vector<8x256xf32>
    tpu.vector_store %arg3[%c0_9, %c0_10], %25 {strides = array<i32>} : memref<8x256xf32, #tpu.memory_space<vmem>>, vector<8x256xf32>,
    return
  }
  func.func @transform_0(%arg0: i32) -> (i32, i32) {
    %c0_i32 = arith.constant 0 : i32
    %c0_i32_0 = arith.constant 0 : i32
    return %arg0, %c0_i32 : i32, i32
  }
  func.func @transform_1(%arg0: i32) -> (i32, i32) {
    %c0_i32 = arith.constant 0 : i32
    %c0_i32_0 = arith.constant 0 : i32
    return %arg0, %c0_i32 : i32, i32
  }
  func.func @transform_2(%arg0: i32) -> (i32, i32) {
    %c0_i32 = arith.constant 0 : i32
    %c0_i32_0 = arith.constant 0 : i32
    return %arg0, %c0_i32 : i32, i32
  }
}

</mosaic_0001>

<bundles_post_ra>
// kernel: tpu_custom_call.1
= control target key start
LH: loop header
LB: loop body
LE: loop exit
PB: predicated region body
PF: predicated region fallthrough
CT: control target
= control target key end

     0   :  { %7 = vsyncpa [#allocation3], 0  ;;  %s162_s0 = inlined_call_operand.hbm [shape: f32[8,256], index: 0, kind: input, shape index: {}]   ;;  %s163_s1 = inlined_call_operand.vmem [shape: f32[8,2], index: 1, kind: input, shape index: {}]   ;;  %s164_s2 = inlined_call_operand.hbm [shape: f32[8,256], index: 2, kind: output, shape index: {}]  }
   0x1   :  { %8 = vsyncpa [#allocation4], 0  ;;  %s133_s9 = smov [#allocation2]  }
   0x2   :  { %s15_s10 = sshll.u32 %s133_s9, 4  ;;  %s16_s10 = int_to_ptr.vmem [resolvable:$true] %s15_s10 }
   0x3   :  { %s97_s11 = scalar_lea.vmem %s16_s10, 256  ;;  %p102_p1 = scmp.lt.s32.totalorder %s16_s10, %s16_s10 }
   0x4   :  { %p98_p0 = scmp.ne.s32.totalorder %s16_s10, %s97_s11  ;;  %p103_p2 = scmp.lt.s32.totalorder %s97_s11, %s97_s11 }
   0x6   :  { %p104_p3 = por %p103_p2, %p102_p1 }
   0x8   :  { %p105_p4 = pnand %p104_p3, %p98_p0 }
   0xa   :  { %108 = shalt.err (!%p105_p4)
}
   0xb   :  { %18 = dma.hbm_to_vmem [thread:$0]  %s162_s0, 256, %s16_s10, [#allocation3]  }
   0xc   :  { %129 = dma.done.wait [#allocation3], 256  }
   0xd   :  { %130 = vsyncadd [#allocation3], 4294967040  ;;  %v24_v0 = vld [vmem:[#allocation2] sm:$0xff]  ;;  %v25_v1 = vld [vmem:[#allocation2 + $0x8] sm:$0xff]  ;;  %v134_v6 = vmov 0   ;;  %v135_v15 = vmov 1  }
   0xe   :  { %v26_v2 = vadd.f32 %v25_v1, %v24_v0  ;;  %v30_v3 = vmul.f32 %v24_v0, %v24_v0  ;;  %v31_v4 = vmul.f32 %v25_v1, %v25_v1  ;;  %85 = vset.pattern.permute.xlu1 %v134_v6  ;;  %86 = vset.pattern.permute.xlu0 %v135_v15  ;;  %v41_v16 = vld [vmem:[%s163_s1] sm:$0xff]  ;;  %s136_s15 = smov 1   ;;  %s137_s16 = smov [#allocation5]  }
   0xf   :  { %s71_s17 = sshll.u32 %s137_s16, 4  ;;  %s72_s17 = int_to_ptr.vmem [resolvable:$true] %s71_s17 }
  0x10   :  { %27 = vadd.xlane.f32.xlu0 %v26_v2  ;;  %v32_v5 = vadd.f32 %v31_v4, %v30_v3  ;;  %s109_s1 = scalar_lea.vmem %s72_s17, 256  ;;  %p114_p6 = scmp.lt.s32.totalorder %s72_s17, %s72_s17 }
  0x11   :  { %p110_p5 = scmp.ne.s32.totalorder %s72_s17, %s109_s1  ;;  %p115_p7 = scmp.lt.s32.totalorder %s109_s1, %s109_s1 }
  0x13   :  { %p116_p8 = por %p115_p7, %p114_p6 }
  0x14   :  { %33 = vadd.xlane.f32.xlu0 %v32_v5 }
  0x15   :  { %p117_p9 = pnand %p116_p8, %p110_p5 }
  0x99   :  { %v28_v7 = vpop.xlane.xlu0 %27 }
  0x9a   :  { %v29_v8 = vmul.f32 0.00390625, %v28_v7 }
  0x9c   :  { %v36_v10 = vmul.f32 %v29_v8, %v29_v8 }
  0x9d   :  { %v34_v9 = vpop.xlane.xlu0 %33 }
  0x9e   :  { %v35_v11 = vmul.f32 0.00390625, %v34_v9 }
  0xa0   :  { %v37_v12 = vsub.f32 %v35_v11, %v36_v10 }
  0xa2   :  { %v38_v13 = vmax.f32 %v37_v12, 0.0 }
  0xa4   :  { %v39_v14 = vadd.f32 1e-05, %v38_v13 }
  0xa6   :  { %87 = vrsqrt.f32 %v39_v14 }
  0xb3   :  { %v88_v17 = vpop.eup %87 }
  0xb4   :  { %v42_v18 = vmul.f32 %v88_v17, %v41_v16 }
  0xb6   :  { %v43_v19 = vmul.f32 %v42_v18, %v29_v8 }
  0xb8   :  { %45 = vrot.lane.b32.xlu1 %v43_v19, %s136_s15 }
  0xbc   :  { %51 = vperm.xlu1 %85, %v42_v18  }
 0x12a   :  { %v46_v20 = vpop.permute.xlu1 %45 }
 0x12b   :  { %v48_v21 = vsub.f32 %v41_v16, %v46_v20 }
 0x12d   :  { %58 = vperm.xlu0 %86, %v48_v21  }
 0x137   :  { %v52_v22 = vpop.permute.xlu1 %51 }
 0x138   :  { %v54_v23 = vmul.f32 %v52_v22, %v24_v0  ;;  %v55_v24 = vmul.f32 %v52_v22, %v25_v1 }
 0x1a8   :  { %v59_v25 = vpop.permute.xlu0 %58 }
 0x1a9   :  { %v61_v26 = vadd.f32 %v59_v25, %v54_v23  ;;  %v62_v27 = vadd.f32 %v59_v25, %v55_v24 }
 0x1ab   :  { %63 = vst [vmem:[#allocation5] sm:$0xff] %v61_v26  ;;  %64 = vst [vmem:[#allocation5 + $0x8] sm:$0xff] %v62_v27 }
 0x1ac   :  { %120 = shalt.err (!%p117_p9)
}
 0x1ad   :  { %74 = dma.vmem_to_hbm [thread:$0]  %s72_s17, 256, %s164_s2, [#allocation4]  }
 0x1ae   :  { %131 = dma.done.wait [#allocation4], 256  }
 0x1af   :  { %132 = vsyncadd [#allocation4], 4294967040 }
 0x1b0   :  { %78 = vsyncpa [#allocation3], 1 }
 0x1b1   :  { %79 = vsyncpa [#allocation4], 1 }

</bundles_post_ra>
